<compile_context>
chip_gen: v7x
topology: tpu7x:2x2x1
jax: 0.10.0
libtpu: 0.0.40
codegen_flags: <defaults>
</compile_context>

<pallas_src>
import jax
import jax.numpy as jnp
from jax.experimental import pallas as pl
from jax.experimental.pallas import tpu as pltpu

CLAMP_MIN = 0.7
CLAMP_MAX = 4.8
STRIDE = 5
PADDING = 1
KSIZE = 9
C_IN = 2
C_OUT = 1

TILE_M_MAX = 8192  # lanes per grid step; ~5.3 MiB/tile f32, double-buffered


def _round_up(v, m):
    return ((v + m - 1) // m) * m


def conv_clamp_kernel(pt_ref, w_ref, b_ref, o_ref):
    # pt_ref: (K, TILE_M) VMEM  -- im2col patches, K on sublanes
    # w_ref:  (K, 1)      VMEM  -- flattened conv weight column (resident)
    # b_ref:  (1, 1)      SMEM  -- bias scalar
    # o_ref:  (1, TILE_M) VMEM  -- lane-dense output row
    prod = pt_ref[...] * w_ref[...]               # VPU, lane-broadcast of w
    s = jnp.sum(prod, axis=0, keepdims=True)      # sublane reduce -> (1, TILE_M)
    o_ref[...] = jnp.clip(s + b_ref[0, 0], CLAMP_MIN, CLAMP_MAX)


def _conv2d_clamp_impl(x, w, b):
    """x: (N, C_in, H, W) f32; w: (C_out, C_in, KH, KW) f32; b: (C_out,) f32."""
    N, C, H, W = x.shape
    Co, Ci, KH, KW = w.shape
    assert C == Ci and Co == 1, "kernel specialized for Conv2d(2, 1, ...)"
    H_out = (H + 2 * PADDING - KH) // STRIDE + 1
    W_out = (W + 2 * PADDING - KW) // STRIDE + 1
    assert H_out >= 1 and W_out >= 1, "output spatial dims must be positive"

    K = C * KH * KW
    M = N * H_out * W_out

    # --- im2col with the K feature dim leading (out spec "CNHW") ---
    # Output: (K, N, H_out, W_out), feature order = (c, kh, kw) which matches
    # w.reshape(Co, C*KH*KW) flattening of OIHW.  reshape to (K, M) is free.
    patches = jax.lax.conv_general_dilated_patches(
        x, (KH, KW), (STRIDE, STRIDE),
        padding=[(PADDING, PADDING), (PADDING, PADDING)],
        dimension_numbers=("NCHW", "OIHW", "CNHW"))
    patches_t = patches.reshape(K, M)

    w_col = w.reshape(Co, K).T.astype(jnp.float32)        # (K, 1)
    b_sc = b.reshape(1, 1).astype(jnp.float32)

    # --- M tiling: full-dim block if small, else ~balanced tiles (ragged last) ---
    if M <= TILE_M_MAX:
        tile_m = M                       # block == full dim, exempt from 128 rule
        num_tiles = 1
    else:
        num_tiles = pl.cdiv(M, TILE_M_MAX)
        tile_m = _round_up(pl.cdiv(M, num_tiles), 512)
        num_tiles = pl.cdiv(M, tile_m)   # last tile may be ragged (OOB discarded)

    out_t = pl.pallas_call(
        conv_clamp_kernel,
        out_shape=jax.ShapeDtypeStruct((1, M), jnp.float32),
        grid=(num_tiles,),
        in_specs=[
            pl.BlockSpec((K, tile_m), lambda i: (0, i)),          # patch slab
            pl.BlockSpec((K, 1), lambda i: (0, 0)),               # resident weight
            pl.BlockSpec(memory_space=pltpu.MemorySpace.SMEM),    # bias scalar
        ],
        out_specs=pl.BlockSpec((1, tile_m), lambda i: (0, i)),
        compiler_params=pltpu.CompilerParams(
            dimension_semantics=("parallel",),
            vmem_limit_bytes=32 * 1024 * 1024),
        cost_estimate=pl.CostEstimate(
            flops=2 * M * K * Co,
            transcendentals=0,
            bytes_accessed=int(4 * (K * M + K + M))),
    )(patches_t, w_col, b_sc)

    y = out_t[0, :M].reshape(N, H_out, W_out)
    return y[:, None, :, :]                                       # NCHW


conv2d_clamp = jax.jit(_conv2d_clamp_impl)


if __name__ == "__main__":
    key = jax.random.PRNGKey(0)
    kx, kw, kb = jax.random.split(key, 3)

    # Small shapes consistent with Conv2d(2, 1, 9, stride=5, padding=1);
    # spatial >= 7 required for a valid output. batch=2, spatial=16.
    x = jax.random.normal(kx, (2, C_IN, 16, 16), dtype=jnp.float32)

    # Deterministic PyTorch-like (uniform) init for conv weight/bias.
    fan_in = C_IN * KSIZE * KSIZE
    bound = 1.0 / (fan_in ** 0.5)
    w = jax.random.uniform(kw, (C_OUT, C_IN, KSIZE, KSIZE),
                           minval=-bound, maxval=bound, dtype=jnp.float32)
    b = jax.random.uniform(kb, (C_OUT,), minval=-bound, maxval=bound,
                           dtype=jnp.float32)

    out = conv2d_clamp(x, w, b)
    jax.block_until_ready(out)

    # Cross-check against XLA's conv as a reference (also validates the
    # (c, kh, kw) feature ordering of conv_general_dilated_patches).
    ref = jax.lax.conv_general_dilated(
        x, w, window_strides=(STRIDE, STRIDE),
        padding=[(PADDING, PADDING), (PADDING, PADDING)],
        dimension_numbers=("NCHW", "OIHW", "NCHW"))
    ref = jnp.clip(ref + b[None, :, None, None], CLAMP_MIN, CLAMP_MAX)
    assert out.shape == ref.shape, (out.shape, ref.shape)
    assert jnp.allclose(out, ref, atol=1e-5, rtol=1e-5)

    print("KERNEL_OK")
</pallas_src>

<mosaic_0001>
module attributes {stable_mosaic.version = 11 : i64} {
  func.func @conv_clamp_kernel(%arg0: i32, %arg1: memref<162x8xf32, #tpu.memory_space<vmem>>, %arg2: memref<162x1xf32, #tpu.memory_space<vmem>>, %arg3: memref<1x1xf32, #tpu.memory_space<smem>>, %arg4: memref<1x8xf32, #tpu.memory_space<vmem>>) attributes {dimension_semantics = [#tpu.dimension_semantics<parallel>], iteration_bounds = array<i64: 1>, scalar_prefetch = 0 : i64, scratch_operands = 0 : i64, tpu.core_type = #tpu.core_type<tc>, window_params = [{transform_indices = @transform_0, window_bounds = array<i64: 162, 8>}, {pipeline_mode = #tpu.pipeline_mode<synchronous>, transform_indices = @transform_1, window_bounds = array<i64: 162, 1>}, {transform_indices = @transform_2, window_bounds = array<i64: 1, 1>}, {transform_indices = @transform_3, window_bounds = array<i64: 1, 8>}]} {
    %c0 = arith.constant 0 : index
    %c0_0 = arith.constant 0 : index
    %0 = vector.load %arg1[%c0, %c0_0] : memref<162x8xf32, #tpu.memory_space<vmem>>, vector<162x8xf32>
    %c0_1 = arith.constant 0 : index
    %c0_2 = arith.constant 0 : index
    %1 = vector.load %arg2[%c0_1, %c0_2] : memref<162x1xf32, #tpu.memory_space<vmem>>, vector<162x1xf32>
    %2 = vector.broadcast %1 : vector<162x1xf32> to vector<162x8xf32>
    %3 = arith.mulf %0, %2 : vector<162x8xf32>
    %cst = arith.constant dense<0.000000e+00> : vector<8xf32>
    %4 = vector.multi_reduction <add>, %3, %cst [0] : vector<162x8xf32> to vector<8xf32>
    %5 = vector.shape_cast %4 : vector<8xf32> to vector<1x8xf32>
    %c0_3 = arith.constant 0 : index
    %c0_4 = arith.constant 0 : index
    %6 = memref.load %arg3[%c0_3, %c0_4] : memref<1x1xf32, #tpu.memory_space<smem>>
    %7 = vector.broadcast %6 : f32 to vector<1x8xf32>
    %8 = arith.addf %5, %7 : vector<1x8xf32>
    %cst_5 = arith.constant 0.699999988 : f32
    %cst_6 = arith.constant 4.800000e+00 : f32
    %9 = vector.broadcast %cst_5 : f32 to vector<1x8xf32>
    %10 = arith.maximumf %9, %8 : vector<1x8xf32>
    %11 = vector.broadcast %cst_6 : f32 to vector<1x8xf32>
    %12 = arith.minimumf %11, %10 : vector<1x8xf32>
    %c0_7 = arith.constant 0 : index
    %c0_8 = arith.constant 0 : index
    %13 = vector.load %arg4[%c0_7, %c0_8] : memref<1x8xf32, #tpu.memory_space<vmem>>, vector<1x8xf32>
    tpu.vector_store %arg4[%c0_7, %c0_8], %12 {strides = array<i32>} : memref<1x8xf32, #tpu.memory_space<vmem>>, vector<1x8xf32>,
    return
  }
  func.func @transform_0(%arg0: i32) -> (i32, i32) {
    %c0_i32 = arith.constant 0 : i32
    %c0_i32_0 = arith.constant 0 : i32
    return %c0_i32, %arg0 : i32, i32
  }
  func.func @transform_1(%arg0: i32) -> (i32, i32) {
    %c0_i32 = arith.constant 0 : i32
    %c0_i32_0 = arith.constant 0 : i32
    %c0_i32_1 = arith.constant 0 : i32
    return %c0_i32, %c0_i32_0 : i32, i32
  }
  func.func @transform_2(%arg0: i32) -> (i32, i32) {
    %c0_i32 = arith.constant 0 : i32
    %c0_i32_0 = arith.constant 0 : i32
    %c0_i32_1 = arith.constant 0 : i32
    return %c0_i32, %c0_i32_0 : i32, i32
  }
  func.func @transform_3(%arg0: i32) -> (i32, i32) {
    %c0_i32 = arith.constant 0 : i32
    %c0_i32_0 = arith.constant 0 : i32
    return %c0_i32, %arg0 : i32, i32
  }
}

</mosaic_0001>

<bundles_post_ra>
// kernel: squeeze.1
= control target key start
LH: loop header
LB: loop body
LE: loop exit
PB: predicated region body
PF: predicated region fallthrough
CT: control target
= control target key end

     0   :  { %s110_s0 = inlined_call_operand.vmem [shape: f32[8], index: 0, kind: input, shape index: {}]   ;;  %s111_s1 = inlined_call_operand.hbm [shape: f32[2,1,2,2], index: 1, kind: output, shape index: {}]  }
   0x1   :  { %v5_v0 = vld [vmem:[%s110_s0] sm:$0x1] }
   0x2   :  { %6 = vst [vmem:[#allocation3] sm:$0x1] %v5_v0 }
   0x3   :  { %2 = vsyncpa [#allocation1], 0  ;;  %vm8_vm0 = vcmask 15360   ;;  %s77_s0 = smov 126   ;;  %s78_s8 = smov 122  }
   0x4   :  { %s79_s9 = smov 124   ;;  %s80_s10 = smov [#allocation0]  }
   0x5   :  { %s43_s11 = sshll.u32 %s80_s10, 4  ;;  %s44_s11 = int_to_ptr.vmem [resolvable:$true] %s43_s11 }
   0x6   :  { %s53_s12 = scalar_lea.vmem %s44_s11, 64  ;;  %p58_p1 = scmp.lt.s32.totalorder %s44_s11, %s44_s11 }
   0x7   :  { %p54_p0 = scmp.ne.s32.totalorder %s44_s11, %s53_s12  ;;  %p59_p2 = scmp.lt.s32.totalorder %s53_s12, %s53_s12 }
   0x9   :  { %v10_v1 = vld [vmem:[#allocation3] sm:$0x1]   ;;  %p60_p3 = por %p59_p2, %p58_p1 }
   0xa   :  { %v22_v2 = vld [vmem:[#allocation3] sm:$0x1]   ;;  %11 = vrot.lane.b32.xlu0 %v10_v1, %s77_s0 }
   0xb   :  { %23 = vrot.lane.b32.xlu1 %v22_v2, %s78_s8  ;;  %v7_v3 = vld [vmem:[#allocation3] sm:$0x1]   ;;  %p61_p4 = pnand %p60_p3, %p54_p0 }
   0xc   :  { %v16_v4 = vld [vmem:[#allocation3] sm:$0x1]   ;;  %9 = vst.msk [vmem:[#allocation2] sm:$0x1] %vm8_vm0, %v7_v3  }
   0xe   :  { %17 = vrot.lane.b32.xlu0 %v16_v4, %s79_s9 }
  0x7c   :  { %v12_v5 = vpop.permute.xlu0 %11  }
  0x7d   :  { %v24_v6 = vpop.permute.xlu1 %23   ;;  %15 = vst.msk [vmem:[#allocation2 + $0x1] sm:$0x1] %vm8_vm0, %v12_v5  }
  0x7e   :  { %27 = vst.msk [vmem:[#allocation2 + $0x9] sm:$0x1] %vm8_vm0, %v24_v6  }
  0x80   :  { %v18_v7 = vpop.permute.xlu0 %17  }
  0x81   :  { %21 = vst.msk [vmem:[#allocation2 + $0x8] sm:$0x1] %vm8_vm0, %v18_v7  }
  0x84   :  { %v31_v8 = vld [vmem:[#allocation2] sm:$0x3] }
  0x85   :  { %33 = vst [vmem:[#allocation0] sm:$0x3] %v31_v8 }
  0x88   :  { %v35_v9 = vld [vmem:[#allocation2 + $0x8] sm:$0x3] }
  0x89   :  { %38 = vst [vmem:[#allocation0 + $0x2] sm:$0x3] %v35_v9 }
  0x8a   :  { %64 = shalt.err (!%p61_p4)
}
  0x8b   :  { %s65_s15 = scalar_lea.hbm %s111_s1, 64 }
  0x8c   :  { %p66_p5 = scmp.ne.s32.totalorder %s111_s1, %s65_s15  ;;  %p69_p6 = scmp.lt.u32.totalorder %s65_s15, %s111_s1 }
  0x8e   :  { %p71_p7 = pnand %p69_p6, %p66_p5 }
  0x90   :  { %74 = shalt.err (!%p71_p7)
}
  0x91   :  { %46 = dma.vmem_to_hbm [thread:$0]  %s44_s11, 64, %s111_s1, [#allocation1]  }
  0x92   :  { %75 = dma.done.wait [#allocation1], 64  }
  0x93   :  { %76 = vsyncadd [#allocation1], 4294967232 }
  0x94   :  { %48 = vsyncpa [#allocation1], 1 }

// kernel: _conv2d_clamp_impl.1
= control target key start
LH: loop header
LB: loop body
LE: loop exit
PB: predicated region body
PF: predicated region fallthrough
CT: control target
= control target key end

     0   :  { %v246_v0 = vmov 0   ;;  %vm183_vm0 = vcmask 64512   ;;  %vm223_vm1 = vcmask 58368   ;;  %vm237_vm2 = vcmask 57344   ;;  %s419_s1 = inlined_call_operand.vmem [shape: f32[162,1], index: 1, kind: input, shape index: {}]   ;;  %s420_s0 = inlined_call_operand.vmem [shape: f32[162,8], index: 0, kind: input, shape index: {}]   ;;  %s421_s2 = inlined_call_operand.<no memory space> [shape: f32[1,1], index: 2, kind: input, shape index: {}]   ;;  %s422_s3 = inlined_call_operand.vmem [shape: f32[1,8], index: 3, kind: output, shape index: {}]  }
   0x1   :  { %245 = vset.pattern.permute.xlu1 %v246_v0  ;;  %244 = vset.pattern.permute.xlu0 %v246_v0  ;;  %v38_v1 = vld [vmem:[%s419_s1 + $0x10] sm:$0xff]  ;;  %v36_v2 = vld [vmem:[%s419_s1] sm:$0xff]  ;;  %v39_v3 = vld [vmem:[%s419_s1 + $0x18] sm:$0xff] }
   0x2   :  { %69 = vperm.xlu1 %245, %v38_v1   ;;  %59 = vperm.xlu0 %244, %v36_v2   ;;  %v37_v4 = vld [vmem:[%s419_s1 + $0x8] sm:$0xff]  ;;  %v40_v6 = vld [vmem:[%s419_s1 + $0x20] sm:$0xff]  ;;  %v43_v7 = vld [vmem:[%s419_s1 + $0x38] sm:$0xff] }
   0x3   :  { %v41_v5 = vld [vmem:[%s419_s1 + $0x28] sm:$0xff]  ;;  %v42_v8 = vld [vmem:[%s419_s1 + $0x30] sm:$0xff]  ;;  %v44_v10 = vld [vmem:[%s419_s1 + $0x40] sm:$0xff] }
   0x4   :  { %v45_v9 = vld [vmem:[%s419_s1 + $0x48] sm:$0xff]  ;;  %v47_v11 = vld [vmem:[%s419_s1 + $0x58] sm:$0xff]  ;;  %v46_v12 = vld [vmem:[%s419_s1 + $0x50] sm:$0xff] }
   0x5   :  { %v49_v13 = vld [vmem:[%s419_s1 + $0x68] sm:$0xff]  ;;  %v48_v14 = vld [vmem:[%s419_s1 + $0x60] sm:$0xff]  ;;  %v51_v15 = vld [vmem:[%s419_s1 + $0x78] sm:$0xff] }
   0x6   :  { %74 = vperm.xlu1 %245, %v39_v3   ;;  %64 = vperm.xlu0 %244, %v37_v4   ;;  %v50_v16 = vld [vmem:[%s419_s1 + $0x70] sm:$0xff]  ;;  %v53_v17 = vld [vmem:[%s419_s1 + $0x88] sm:$0xff]  ;;  %v52_v18 = vld [vmem:[%s419_s1 + $0x80] sm:$0xff] }
   0x7   :  { %v55_v19 = vld [vmem:[%s419_s1 + $0x98] sm:$0xff]  ;;  %v54_v20 = vld [vmem:[%s419_s1 + $0x90] sm:$0xff]  ;;  %v56_v21 = vld [vmem:[%s419_s1 + $0xa0] sm:$0x3] }
   0x8   :  { %v15_v24 = vld [vmem:[%s420_s0] sm:$0xff]  ;;  %v17_v25 = vld [vmem:[%s420_s0 + $0x10] sm:$0xff]  ;;  %v16_v26 = vld [vmem:[%s420_s0 + $0x8] sm:$0xff] }
   0x9   :  { %v18_v29 = vld [vmem:[%s420_s0 + $0x18] sm:$0xff]  ;;  %v19_v33 = vld [vmem:[%s420_s0 + $0x20] sm:$0xff]  ;;  %v20_v39 = vld [vmem:[%s420_s0 + $0x28] sm:$0xff] }
   0xa   :  { %84 = vperm.xlu1 %245, %v41_v5   ;;  %79 = vperm.xlu0 %244, %v40_v6   ;;  %v21_v44 = vld [vmem:[%s420_s0 + $0x30] sm:$0xff]  ;;  %v22_v49 = vld [vmem:[%s420_s0 + $0x38] sm:$0xff]  ;;  %v23_v54 = vld [vmem:[%s420_s0 + $0x40] sm:$0xff] }
   0xb   :  { %v24_v59 = vld [vmem:[%s420_s0 + $0x48] sm:$0xff]  ;;  %v25_v0 = vld [vmem:[%s420_s0 + $0x50] sm:$0xff]  ;;  %v26_v5 = vld [vmem:[%s420_s0 + $0x58] sm:$0xff] }
   0xe   :  { %94 = vperm.xlu1 %245, %v43_v7   ;;  %89 = vperm.xlu0 %244, %v42_v8  }
  0x12   :  { %104 = vperm.xlu1 %245, %v45_v9   ;;  %99 = vperm.xlu0 %244, %v44_v10   ;;  %v27_v10 = vld [vmem:[%s420_s0 + $0x60] sm:$0xff] }
  0x16   :  { %114 = vperm.xlu1 %245, %v47_v11   ;;  %109 = vperm.xlu0 %244, %v46_v12  }
  0x1a   :  { %124 = vperm.xlu1 %245, %v49_v13   ;;  %119 = vperm.xlu0 %244, %v48_v14  }
  0x1e   :  { %134 = vperm.xlu1 %245, %v51_v15   ;;  %129 = vperm.xlu0 %244, %v50_v16   ;;  %v28_v15 = vld [vmem:[%s420_s0 + $0x68] sm:$0xff] }
  0x22   :  { %144 = vperm.xlu1 %245, %v53_v17   ;;  %139 = vperm.xlu0 %244, %v52_v18  }
  0x26   :  { %154 = vperm.xlu1 %245, %v55_v19   ;;  %149 = vperm.xlu0 %244, %v54_v20   ;;  %v29_v20 = vld [vmem:[%s420_s0 + $0x70] sm:$0xff] }
  0x2a   :  { %159 = vperm.xlu0 %244, %v56_v21  }
  0x81   :  { %v70_v22 = vpop.permute.xlu1 %69  ;;  %v60_v23 = vpop.permute.xlu0 %59 }
  0x82   :  { %v162_v27 = vmul.f32 %v60_v23, %v15_v24  ;;  %v164_v31 = vmul.f32 %v70_v22, %v17_v25  ;;  %v30_v25 = vld [vmem:[%s420_s0 + $0x78] sm:$0xff] }
  0x84   :  { %v184_v34 = vsel %vm183_vm0, %v162_v27, 0.0  ;;  %v187_v41 = vsel %vm183_vm0, %v164_v31, 0.0 }
  0x85   :  { %v75_v28 = vpop.permute.xlu1 %74  ;;  %v65_v30 = vpop.permute.xlu0 %64 }
  0x86   :  { %v163_v32 = vmul.f32 %v65_v30, %v16_v26  ;;  %v165_v35 = vmul.f32 %v75_v28, %v18_v29  ;;  %v31_v30 = vld [vmem:[%s420_s0 + $0x80] sm:$0xff] }
  0x88   :  { %v185_v36 = vsel %vm183_vm0, %v163_v32, 0.0  ;;  %v189_v45 = vsel %vm183_vm0, %v165_v35, 0.0  ;;  %v32_v35 = vld [vmem:[%s420_s0 + $0x88] sm:$0xff] }
  0x89   :  { %v186_v37 = vadd.f32 %v185_v36, %v184_v34  ;;  %v85_v38 = vpop.permute.xlu1 %84  ;;  %v80_v40 = vpop.permute.xlu0 %79 }
  0x8a   :  { %v166_v42 = vmul.f32 %v80_v40, %v19_v33  ;;  %v167_v46 = vmul.f32 %v85_v38, %v20_v39  ;;  %v33_v40 = vld [vmem:[%s420_s0 + $0x90] sm:$0xff] }
  0x8b   :  { %v188_v43 = vadd.f32 %v187_v41, %v186_v37 }
  0x8c   :  { %v191_v51 = vsel %vm183_vm0, %v166_v42, 0.0  ;;  %v193_v55 = vsel %vm183_vm0, %v167_v46, 0.0 }
  0x8d   :  { %v190_v47 = vadd.f32 %v189_v45, %v188_v43  ;;  %v95_v48 = vpop.permute.xlu1 %94  ;;  %v90_v50 = vpop.permute.xlu0 %89  ;;  %v34_v45 = vld [vmem:[%s420_s0 + $0x98] sm:$0xff] }
  0x8e   :  { %v168_v52 = vmul.f32 %v90_v50, %v21_v44  ;;  %v169_v56 = vmul.f32 %v95_v48, %v22_v49  ;;  %v35_v50 = vld [vmem:[%s420_s0 + $0xa0] sm:$0x3] }
  0x8f   :  { %v192_v53 = vadd.f32 %v191_v51, %v190_v47 }
  0x90   :  { %v195_v61 = vsel %vm183_vm0, %v168_v52, 0.0  ;;  %v197_v1 = vsel %vm183_vm0, %v169_v56, 0.0 }
  0x91   :  { %v194_v57 = vadd.f32 %v193_v55, %v192_v53  ;;  %v105_v58 = vpop.permute.xlu1 %104  ;;  %v100_v60 = vpop.permute.xlu0 %99 }
  0x92   :  { %v170_v62 = vmul.f32 %v100_v60, %v23_v54  ;;  %v171_v2 = vmul.f32 %v105_v58, %v24_v59 }
  0x93   :  { %v196_v63 = vadd.f32 %v195_v61, %v194_v57 }
  0x94   :  { %v199_v7 = vsel %vm183_vm0, %v170_v62, 0.0  ;;  %v201_v11 = vsel %vm183_vm0, %v171_v2, 0.0 }
  0x95   :  { %v198_v3 = vadd.f32 %v197_v1, %v196_v63  ;;  %v115_v4 = vpop.permute.xlu1 %114  ;;  %v110_v6 = vpop.permute.xlu0 %109 }
  0x96   :  { %v172_v8 = vmul.f32 %v110_v6, %v25_v0  ;;  %v173_v12 = vmul.f32 %v115_v4, %v26_v5 }
  0x97   :  { %v200_v9 = vadd.f32 %v199_v7, %v198_v3  ;;  %v233_v3 = vstv %s421_s2 }
  0x98   :  { %v203_v17 = vsel %vm183_vm0, %v172_v8, 0.0  ;;  %v205_v21 = vsel %vm183_vm0, %v173_v12, 0.0 }
  0x99   :  { %v202_v13 = vadd.f32 %v201_v11, %v200_v9  ;;  %v125_v14 = vpop.permute.xlu1 %124  ;;  %v120_v16 = vpop.permute.xlu0 %119 }
  0x9a   :  { %v174_v18 = vmul.f32 %v120_v16, %v27_v10  ;;  %v175_v22 = vmul.f32 %v125_v14, %v28_v15 }
  0x9b   :  { %v204_v19 = vadd.f32 %v203_v17, %v202_v13 }
  0x9c   :  { %v207_v27 = vsel %vm183_vm0, %v174_v18, 0.0  ;;  %v209_v31 = vsel %vm183_vm0, %v175_v22, 0.0 }
  0x9d   :  { %v206_v23 = vadd.f32 %v205_v21, %v204_v19  ;;  %v135_v24 = vpop.permute.xlu1 %134  ;;  %v130_v26 = vpop.permute.xlu0 %129 }
  0x9e   :  { %v176_v28 = vmul.f32 %v130_v26, %v29_v20  ;;  %v177_v32 = vmul.f32 %v135_v24, %v30_v25 }
  0x9f   :  { %v208_v29 = vadd.f32 %v207_v27, %v206_v23 }
  0xa0   :  { %v211_v37 = vsel %vm183_vm0, %v176_v28, 0.0  ;;  %v213_v41 = vsel %vm183_vm0, %v177_v32, 0.0 }
  0xa1   :  { %v210_v33 = vadd.f32 %v209_v31, %v208_v29  ;;  %v145_v34 = vpop.permute.xlu1 %144  ;;  %v140_v36 = vpop.permute.xlu0 %139 }
  0xa2   :  { %v178_v38 = vmul.f32 %v140_v36, %v31_v30  ;;  %v179_v42 = vmul.f32 %v145_v34, %v32_v35 }
  0xa3   :  { %v212_v39 = vadd.f32 %v211_v37, %v210_v33 }
  0xa4   :  { %v215_v47 = vsel %vm183_vm0, %v178_v38, 0.0  ;;  %v217_v51 = vsel %vm183_vm0, %v179_v42, 0.0 }
  0xa5   :  { %v214_v43 = vadd.f32 %v213_v41, %v212_v39  ;;  %v155_v44 = vpop.permute.xlu1 %154  ;;  %v150_v46 = vpop.permute.xlu0 %149 }
  0xa6   :  { %v180_v48 = vmul.f32 %v150_v46, %v33_v40  ;;  %v181_v52 = vmul.f32 %v155_v44, %v34_v45 }
  0xa7   :  { %v216_v49 = vadd.f32 %v215_v47, %v214_v43 }
  0xa8   :  { %v219_v55 = vsel %vm183_vm0, %v180_v48, 0.0  ;;  %v221_v58 = vsel %vm183_vm0, %v181_v52, 0.0 }
  0xa9   :  { %v218_v53 = vadd.f32 %v217_v51, %v216_v49  ;;  %v160_v54 = vpop.permute.xlu0 %159 }
  0xaa   :  { %v182_v56 = vmul.f32 %v160_v54, %v35_v50 }
  0xab   :  { %v220_v57 = vadd.f32 %v219_v55, %v218_v53 }
  0xac   :  { %v224_v60 = vsel %vm223_vm1, %v182_v56, 0.0 }
  0xad   :  { %v222_v59 = vadd.f32 %v221_v58, %v220_v57 }
  0xaf   :  { %v225_v61 = vadd.f32 %v224_v60, %v222_v59 }
  0xb1   :  { %v226_v62 = vrot.slane %v225_v61, 4 }
  0xb3   :  { %v227_v63 = vadd.f32 %v226_v62, %v225_v61 }
  0xb5   :  { %v228_v0 = vrot.slane %v227_v63, 2 }
  0xb7   :  { %v229_v1 = vadd.f32 %v228_v0, %v227_v63 }
  0xb9   :  { %v230_v2 = vrot.slane %v229_v1, 1 }
  0xbb   :  { %v231_v4 = vadd.f32 %v230_v2, %v229_v1 }
  0xbd   :  { %v234_v5 = vadd.f32 %v233_v3, %v231_v4 }
  0xbf   :  { %v235_v6 = vmax.f32 %v234_v5, 0.7 }
  0xc1   :  { %v236_v7 = vmin.f32 %v235_v6, 4.8 }
  0xc3   :  { %238 = vst.msk [vmem:[%s422_s3] sm:$0x1] %vm237_vm2, %v236_v7 }

</bundles_post_ra>
